<compile_context>
chip_gen: v6e
topology: v6e:2x2x1
jax: 0.10.0
libtpu: 0.0.40
codegen_flags: <defaults>
</compile_context>

<pallas_src>
import math

import jax
import jax.numpy as jnp
from jax import lax
from jax.experimental import pallas as pl
from jax.experimental.pallas import tpu as pltpu

# Problem sizes (small, consistent with the module's forward: (b, num_tokens, d_in)).
B = 2            # batch
T = 8            # num_tokens (context_length)
D_IN = 32        # d_in
D_OUT = 32       # d_out
H = 4            # num_heads
HD = D_OUT // H  # head_dim
G = B * H        # batched (batch, head) groups


def mha_kernel(xg_ref, wqg_ref, wkg_ref, wvg_ref, wog_ref, bo_ref, o_ref):
    """Single invocation: all (batch, head) groups processed with batched matmuls."""
    xg = xg_ref[...]                                   # (G, T, D_IN)

    # Per-group projections (head-major weights; softmax scale pre-folded into Q).
    q = jnp.einsum("gti,gid->gtd", xg, wqg_ref[...],
                   preferred_element_type=jnp.float32)  # (G, T, HD)
    k = jnp.einsum("gti,gid->gtd", xg, wkg_ref[...],
                   preferred_element_type=jnp.float32)  # (G, T, HD)
    v = jnp.einsum("gti,gid->gtd", xg, wvg_ref[...],
                   preferred_element_type=jnp.float32)  # (G, T, HD)

    # Scores for all groups in one batched matmul.
    s = jnp.einsum("gtd,gsd->gts", q, k,
                   preferred_element_type=jnp.float32)  # (G, T, T)

    # Additive causal mask (0 on/below diagonal, -1e30 above) — matches
    # torch.triu(..., diagonal=1) masked_fill(-inf) after exp underflow.
    row = lax.broadcasted_iota(jnp.int32, (T, T), 0)
    col = lax.broadcasted_iota(jnp.int32, (T, T), 1)
    mask_add = jnp.where(col > row, jnp.float32(-1e30), jnp.float32(0.0))
    s = s + mask_add[None]

    # Numerically-stable softmax (one chain for the whole block); reciprocal
    # runs on the otherwise-idle EUP slot.
    m = jnp.max(s, axis=-1, keepdims=True)
    p = jnp.exp(s - m)
    w = p * pl.reciprocal(jnp.sum(p, axis=-1, keepdims=True), approx=True)

    # Context and per-group partial output projection (head-major Wo rows).
    ctx = jnp.einsum("gts,gsd->gtd", w, v,
                     preferred_element_type=jnp.float32)          # (G, T, HD)
    out_g = jnp.einsum("gtd,gde->gte", ctx, wog_ref[...],
                       preferred_element_type=jnp.float32)        # (G, T, D_OUT)

    # Reduce the head partials (leading axis) and add the out_proj bias.
    out = jnp.sum(out_g.reshape(B, H, T, D_OUT), axis=1)          # (B, T, D_OUT)
    o_ref[...] = (out + bo_ref[...]).astype(o_ref.dtype)          # single store


def multi_head_attention(x, wq, wk, wv, wo, bo):
    """x: (B, T, D_IN); wq/wk/wv: (D_IN, D_OUT); wo: (D_OUT, D_OUT); bo: (1, D_OUT)."""
    scale = 1.0 / math.sqrt(HD)

    def head_major(w):
        # (D_IN, D_OUT) -> (G, D_IN, HD): head-major, broadcast over batch.
        w3 = jnp.transpose(w.reshape(D_IN, H, HD), (1, 0, 2))       # (H, D_IN, HD)
        return jnp.broadcast_to(w3[None], (B, H, D_IN, HD)).reshape(G, D_IN, HD)

    # Wrapper-side layout plumbing (free): head-major weights, scale folded into Q,
    # x replicated per head so the kernel uses only leading-batch-dim matmuls.
    wq_g = head_major(wq * scale)
    wk_g = head_major(wk)
    wv_g = head_major(wv)
    wo_g = jnp.broadcast_to(wo.reshape(H, HD, D_OUT)[None],
                            (B, H, HD, D_OUT)).reshape(G, HD, D_OUT)
    x_g = jnp.broadcast_to(x[:, None], (B, H, T, D_IN)).reshape(G, T, D_IN)

    return pl.pallas_call(
        mha_kernel,
        out_shape=jax.ShapeDtypeStruct((B, T, D_OUT), x.dtype),
        grid_spec=pltpu.PrefetchScalarGridSpec(
            num_scalar_prefetch=0,
            grid=(1,),  # whole problem (<40 KB) resident in VMEM; one pipeline step
            in_specs=[
                pl.BlockSpec((G, T, D_IN), lambda i: (0, 0, 0)),      # x per group
                pl.BlockSpec((G, D_IN, HD), lambda i: (0, 0, 0)),     # Wq (head-major)
                pl.BlockSpec((G, D_IN, HD), lambda i: (0, 0, 0)),     # Wk (head-major)
                pl.BlockSpec((G, D_IN, HD), lambda i: (0, 0, 0)),     # Wv (head-major)
                pl.BlockSpec((G, HD, D_OUT), lambda i: (0, 0, 0)),    # Wo (head-major)
                pl.BlockSpec((1, D_OUT), lambda i: (0, 0)),           # out_proj bias
            ],
            out_specs=pl.BlockSpec((B, T, D_OUT), lambda i: (0, 0, 0)),
        ),
        compiler_params=pltpu.CompilerParams(dimension_semantics=("arbitrary",)),
    )(x_g, wq_g, wk_g, wv_g, wo_g, bo)


def reference_mha(x, wq, wk, wv, wo, bo):
    """Pure-JAX reference mirroring the PyTorch forward."""
    b, t, _ = x.shape
    q = x @ wq
    k = x @ wk
    v = x @ wv
    q = q.reshape(b, t, H, HD).transpose(0, 2, 1, 3)
    k = k.reshape(b, t, H, HD).transpose(0, 2, 1, 3)
    v = v.reshape(b, t, H, HD).transpose(0, 2, 1, 3)
    s = jnp.einsum("bhtd,bhsd->bhts", q, k)
    mask = jnp.triu(jnp.ones((t, t), dtype=bool), k=1)
    s = jnp.where(mask[None, None], -jnp.inf, s)
    w = jax.nn.softmax(s / math.sqrt(HD), axis=-1)
    ctx = jnp.einsum("bhts,bhsd->bhtd", w, v)
    ctx = ctx.transpose(0, 2, 1, 3).reshape(b, t, D_OUT)
    return ctx @ wo + bo


if __name__ == "__main__":
    key = jax.random.PRNGKey(0)
    kx, kq, kk, kv, ko, kb = jax.random.split(key, 6)

    x = jax.random.uniform(kx, (B, T, D_IN), dtype=jnp.float32)

    # Deterministic "synthetic checkpoint": weights stored as (d_in, d_out)
    # (transposed relative to torch.nn.Linear's (out, in) layout).
    wq = jax.random.uniform(kq, (D_IN, D_OUT), dtype=jnp.float32, minval=-0.2, maxval=0.2)
    wk = jax.random.uniform(kk, (D_IN, D_OUT), dtype=jnp.float32, minval=-0.2, maxval=0.2)
    wv = jax.random.uniform(kv, (D_IN, D_OUT), dtype=jnp.float32, minval=-0.2, maxval=0.2)
    wo = jax.random.uniform(ko, (D_OUT, D_OUT), dtype=jnp.float32, minval=-0.2, maxval=0.2)
    bo = jax.random.uniform(kb, (1, D_OUT), dtype=jnp.float32, minval=-0.1, maxval=0.1)

    out = multi_head_attention(x, wq, wk, wv, wo, bo)
    out = jax.block_until_ready(out)

    ref = reference_mha(x, wq, wk, wv, wo, bo)
    assert out.shape == (B, T, D_OUT)
    # Tolerance loosened slightly to accommodate the approximate (EUP) reciprocal
    # used for the softmax normalization.
    assert jnp.allclose(out, ref, atol=5e-3, rtol=5e-3)

    print("KERNEL_OK")
</pallas_src>

<mosaic_0001>
module attributes {stable_mosaic.version = 11 : i64} {
  func.func @mha_kernel(%arg0: i32, %arg1: memref<8x8x32xf32, #tpu.memory_space<vmem>>, %arg2: memref<8x32x8xf32, #tpu.memory_space<vmem>>, %arg3: memref<8x32x8xf32, #tpu.memory_space<vmem>>, %arg4: memref<8x32x8xf32, #tpu.memory_space<vmem>>, %arg5: memref<8x8x32xf32, #tpu.memory_space<vmem>>, %arg6: memref<1x32xf32, #tpu.memory_space<vmem>>, %arg7: memref<2x8x32xf32, #tpu.memory_space<vmem>>) attributes {dimension_semantics = [#tpu.dimension_semantics<arbitrary>], iteration_bounds = array<i64: 1>, scalar_prefetch = 0 : i64, scratch_operands = 0 : i64, tpu.core_type = #tpu.core_type<tc>, window_params = [{pipeline_mode = #tpu.pipeline_mode<synchronous>, transform_indices = @transform_0, window_bounds = array<i64: 8, 8, 32>}, {pipeline_mode = #tpu.pipeline_mode<synchronous>, transform_indices = @transform_1, window_bounds = array<i64: 8, 32, 8>}, {pipeline_mode = #tpu.pipeline_mode<synchronous>, transform_indices = @transform_2, window_bounds = array<i64: 8, 32, 8>}, {pipeline_mode = #tpu.pipeline_mode<synchronous>, transform_indices = @transform_3, window_bounds = array<i64: 8, 32, 8>}, {pipeline_mode = #tpu.pipeline_mode<synchronous>, transform_indices = @transform_4, window_bounds = array<i64: 8, 8, 32>}, {pipeline_mode = #tpu.pipeline_mode<synchronous>, transform_indices = @transform_5, window_bounds = array<i64: 1, 32>}, {pipeline_mode = #tpu.pipeline_mode<synchronous>, transform_indices = @transform_6, window_bounds = array<i64: 2, 8, 32>}]} {
    %c0 = arith.constant 0 : index
    %c0_0 = arith.constant 0 : index
    %c0_1 = arith.constant 0 : index
    %0 = vector.load %arg1[%c0, %c0_0, %c0_1] : memref<8x8x32xf32, #tpu.memory_space<vmem>>, vector<8x8x32xf32>
    %c0_2 = arith.constant 0 : index
    %c0_3 = arith.constant 0 : index
    %c0_4 = arith.constant 0 : index
    %1 = vector.load %arg2[%c0_2, %c0_3, %c0_4] : memref<8x32x8xf32, #tpu.memory_space<vmem>>, vector<8x32x8xf32>
    "tpu.trace_start"() <{level = 10 : i32, message = "gti,gid->gtd"}> : () -> ()
    %cst = arith.constant dense<0.000000e+00> : vector<8x8x8xf32>
    %2 = tpu.matmul %0, %1, %cst {dimension_numbers = #tpu.dot_dimension_numbers<[2], [1], [1], [2], [0, 0, 0, 1, 1, 2], [0], [0]>} : vector<8x8x32xf32>, vector<8x32x8xf32>, vector<8x8x8xf32> -> vector<8x8x8xf32>
    "tpu.trace_stop"() : () -> ()
    %c0_5 = arith.constant 0 : index
    %c0_6 = arith.constant 0 : index
    %c0_7 = arith.constant 0 : index
    %3 = vector.load %arg3[%c0_5, %c0_6, %c0_7] : memref<8x32x8xf32, #tpu.memory_space<vmem>>, vector<8x32x8xf32>
    "tpu.trace_start"() <{level = 10 : i32, message = "gti,gid->gtd"}> : () -> ()
    %cst_8 = arith.constant dense<0.000000e+00> : vector<8x8x8xf32>
    %4 = tpu.matmul %0, %3, %cst_8 {dimension_numbers = #tpu.dot_dimension_numbers<[2], [1], [1], [2], [0, 0, 0, 1, 1, 2], [0], [0]>} : vector<8x8x32xf32>, vector<8x32x8xf32>, vector<8x8x8xf32> -> vector<8x8x8xf32>
    "tpu.trace_stop"() : () -> ()
    %c0_9 = arith.constant 0 : index
    %c0_10 = arith.constant 0 : index
    %c0_11 = arith.constant 0 : index
    %5 = vector.load %arg4[%c0_9, %c0_10, %c0_11] : memref<8x32x8xf32, #tpu.memory_space<vmem>>, vector<8x32x8xf32>
    "tpu.trace_start"() <{level = 10 : i32, message = "gti,gid->gtd"}> : () -> ()
    %cst_12 = arith.constant dense<0.000000e+00> : vector<8x8x8xf32>
    %6 = tpu.matmul %0, %5, %cst_12 {dimension_numbers = #tpu.dot_dimension_numbers<[2], [1], [1], [2], [0, 0, 0, 1, 1, 2], [0], [0]>} : vector<8x8x32xf32>, vector<8x32x8xf32>, vector<8x8x8xf32> -> vector<8x8x8xf32>
    "tpu.trace_stop"() : () -> ()
    "tpu.trace_start"() <{level = 10 : i32, message = "gtd,gsd->gts"}> : () -> ()
    %cst_13 = arith.constant dense<0.000000e+00> : vector<8x8x8xf32>
    %7 = tpu.matmul %2, %4, %cst_13 {dimension_numbers = #tpu.dot_dimension_numbers<[2], [2], [1], [1], [0, 0, 0, 1, 1, 1], [0], [0]>} : vector<8x8x8xf32>, vector<8x8x8xf32>, vector<8x8x8xf32> -> vector<8x8x8xf32>
    "tpu.trace_stop"() : () -> ()
    %8 = tpu.iota {dimensions = array<i32: 0>} : vector<8x8xi32>
    %9 = tpu.iota {dimensions = array<i32: 1>} : vector<8x8xi32>
    %10 = arith.cmpi sgt, %9, %8 : vector<8x8xi32>
    %cst_14 = arith.constant -1.000000e+30 : f32
    %cst_15 = arith.constant 0.000000e+00 : f32
    %11 = vector.broadcast %cst_14 : f32 to vector<8x8xf32>
    %12 = vector.broadcast %cst_15 : f32 to vector<8x8xf32>
    %13 = arith.select %10, %11, %12 : vector<8x8xi1>, vector<8x8xf32>
    %14 = vector.shape_cast %13 : vector<8x8xf32> to vector<1x8x8xf32>
    %15 = vector.broadcast %14 : vector<1x8x8xf32> to vector<8x8x8xf32>
    %16 = arith.addf %7, %15 : vector<8x8x8xf32>
    %cst_16 = arith.constant dense<0xFF800000> : vector<8x8xf32>
    %17 = vector.multi_reduction <maximumf>, %16, %cst_16 [2] : vector<8x8x8xf32> to vector<8x8xf32>
    %18 = vector.shape_cast %17 : vector<8x8xf32> to vector<8x8x1xf32>
    %19 = vector.broadcast %18 : vector<8x8x1xf32> to vector<8x8x8xf32>
    %20 = arith.subf %16, %19 : vector<8x8x8xf32>
    %21 = math.exp %20 : vector<8x8x8xf32>
    %cst_17 = arith.constant dense<0.000000e+00> : vector<8x8xf32>
    %22 = vector.multi_reduction <add>, %21, %cst_17 [2] : vector<8x8x8xf32> to vector<8x8xf32>
    %23 = vector.shape_cast %22 : vector<8x8xf32> to vector<8x8x1xf32>
    %24 = tpu.reciprocal %23 {approx = true} : vector<8x8x1xf32> -> vector<8x8x1xf32>
    %25 = vector.broadcast %24 : vector<8x8x1xf32> to vector<8x8x8xf32>
    %26 = arith.mulf %21, %25 : vector<8x8x8xf32>
    "tpu.trace_start"() <{level = 10 : i32, message = "gts,gsd->gtd"}> : () -> ()
    %cst_18 = arith.constant dense<0.000000e+00> : vector<8x8x8xf32>
    %27 = tpu.matmul %26, %6, %cst_18 {dimension_numbers = #tpu.dot_dimension_numbers<[2], [1], [1], [2], [0, 0, 0, 1, 1, 2], [0], [0]>} : vector<8x8x8xf32>, vector<8x8x8xf32>, vector<8x8x8xf32> -> vector<8x8x8xf32>
    "tpu.trace_stop"() : () -> ()
    %c0_19 = arith.constant 0 : index
    %c0_20 = arith.constant 0 : index
    %c0_21 = arith.constant 0 : index
    %28 = vector.load %arg5[%c0_19, %c0_20, %c0_21] : memref<8x8x32xf32, #tpu.memory_space<vmem>>, vector<8x8x32xf32>
    "tpu.trace_start"() <{level = 10 : i32, message = "gtd,gde->gte"}> : () -> ()
    %cst_22 = arith.constant dense<0.000000e+00> : vector<8x8x32xf32>
    %29 = tpu.matmul %27, %28, %cst_22 {dimension_numbers = #tpu.dot_dimension_numbers<[2], [1], [1], [2], [0, 0, 0, 1, 1, 2], [0], [0]>} : vector<8x8x8xf32>, vector<8x8x32xf32>, vector<8x8x32xf32> -> vector<8x8x32xf32>
    "tpu.trace_stop"() : () -> ()
    %30 = vector.shape_cast %29 : vector<8x8x32xf32> to vector<2x4x8x32xf32>
    %cst_23 = arith.constant dense<0.000000e+00> : vector<2x8x32xf32>
    %31 = vector.multi_reduction <add>, %30, %cst_23 [1] : vector<2x4x8x32xf32> to vector<2x8x32xf32>
    %c0_24 = arith.constant 0 : index
    %c0_25 = arith.constant 0 : index
    %32 = vector.load %arg6[%c0_24, %c0_25] : memref<1x32xf32, #tpu.memory_space<vmem>>, vector<1x32xf32>
    %33 = vector.shape_cast %32 : vector<1x32xf32> to vector<1x1x32xf32>
    %34 = vector.broadcast %33 : vector<1x1x32xf32> to vector<2x8x32xf32>
    %35 = arith.addf %31, %34 : vector<2x8x32xf32>
    %c0_26 = arith.constant 0 : index
    %c0_27 = arith.constant 0 : index
    %c0_28 = arith.constant 0 : index
    %36 = vector.load %arg7[%c0_26, %c0_27, %c0_28] : memref<2x8x32xf32, #tpu.memory_space<vmem>>, vector<2x8x32xf32>
    tpu.vector_store %arg7[%c0_26, %c0_27, %c0_28], %35 {strides = array<i32>} : memref<2x8x32xf32, #tpu.memory_space<vmem>>, vector<2x8x32xf32>,
    return
  }
  func.func @transform_0(%arg0: i32) -> (i32, i32, i32) {
    %c0_i32 = arith.constant 0 : i32
    %c0_i32_0 = arith.constant 0 : i32
    %c0_i32_1 = arith.constant 0 : i32
    %c0_i32_2 = arith.constant 0 : i32
    return %c0_i32, %c0_i32_0, %c0_i32_1 : i32, i32, i32
  }
  func.func @transform_1(%arg0: i32) -> (i32, i32, i32) {
    %c0_i32 = arith.constant 0 : i32
    %c0_i32_0 = arith.constant 0 : i32
    %c0_i32_1 = arith.constant 0 : i32
    %c0_i32_2 = arith.constant 0 : i32
    return %c0_i32, %c0_i32_0, %c0_i32_1 : i32, i32, i32
  }
  func.func @transform_2(%arg0: i32) -> (i32, i32, i32) {
    %c0_i32 = arith.constant 0 : i32
    %c0_i32_0 = arith.constant 0 : i32
    %c0_i32_1 = arith.constant 0 : i32
    %c0_i32_2 = arith.constant 0 : i32
    return %c0_i32, %c0_i32_0, %c0_i32_1 : i32, i32, i32
  }
  func.func @transform_3(%arg0: i32) -> (i32, i32, i32) {
    %c0_i32 = arith.constant 0 : i32
    %c0_i32_0 = arith.constant 0 : i32
    %c0_i32_1 = arith.constant 0 : i32
    %c0_i32_2 = arith.constant 0 : i32
    return %c0_i32, %c0_i32_0, %c0_i32_1 : i32, i32, i32
  }
  func.func @transform_4(%arg0: i32) -> (i32, i32, i32) {
    %c0_i32 = arith.constant 0 : i32
    %c0_i32_0 = arith.constant 0 : i32
    %c0_i32_1 = arith.constant 0 : i32
    %c0_i32_2 = arith.constant 0 : i32
    return %c0_i32, %c0_i32_0, %c0_i32_1 : i32, i32, i32
  }
  func.func @transform_5(%arg0: i32) -> (i32, i32) {
    %c0_i32 = arith.constant 0 : i32
    %c0_i32_0 = arith.constant 0 : i32
    %c0_i32_1 = arith.constant 0 : i32
    return %c0_i32, %c0_i32_0 : i32, i32
  }
  func.func @transform_6(%arg0: i32) -> (i32, i32, i32) {
    %c0_i32 = arith.constant 0 : i32
    %c0_i32_0 = arith.constant 0 : i32
    %c0_i32_1 = arith.constant 0 : i32
    %c0_i32_2 = arith.constant 0 : i32
    return %c0_i32, %c0_i32_0, %c0_i32_1 : i32, i32, i32
  }
}

</mosaic_0001>

<bundles_post_ra>
// kernel: tpu_custom_call.1
= control target key start
LH: loop header
LB: loop body
LE: loop exit
PB: predicated region body
PF: predicated region fallthrough
CT: control target
= control target key end

     0   :  { %v4421_v2 = vmov 0.0   ;;  %vm64_vm0 = vcmask 261120   ;;  %vm4422_vm1 = vmmov 0   ;;  %s5160_s0 = inlined_call_operand.vmem [shape: f32[8,8,32], index: 0, kind: input, shape index: {}]   ;;  %s5161_s1 = inlined_call_operand.vmem [shape: f32[8,32,8], index: 1, kind: input, shape index: {}]   ;;  %s5162_s2 = inlined_call_operand.vmem [shape: f32[8,32,8], index: 2, kind: input, shape index: {}]   ;;  %s5163_s3 = inlined_call_operand.vmem [shape: f32[8,32,8], index: 3, kind: input, shape index: {}]   ;;  %s5164_s4 = inlined_call_operand.vmem [shape: f32[8,8,32], index: 4, kind: input, shape index: {}]   ;;  %s5165_s5 = inlined_call_operand.vmem [shape: f32[1,32], index: 5, kind: input, shape index: {}]   ;;  %s5166_s6 = inlined_call_operand.hbm [shape: f32[2,8,32], index: 6, kind: output, shape index: {}]  }
   0x1   :  { %v35_v0 = vld [vmem:[%s5161_s1 + $0x18] sm:$0xff]  ;;  %3978 = vmatprep.subr.mxu0 %v4421_v2  ;;  %3989 = vmatprep.subr.mxu1 %v4421_v2  ;;  %v34_v3 = vld [vmem:[%s5161_s1 + $0x10] sm:$0xff]  ;;  %v33_v5 = vld [vmem:[%s5161_s1 + $0x8] sm:$0xff] }
   0x2   :  { %v39_v1 = vld [vmem:[%s5161_s1 + $0x38] sm:$0xff]  ;;  %v38_v4 = vld [vmem:[%s5161_s1 + $0x30] sm:$0xff]  ;;  %3979 = vmatpush3.msra.mxu0 %v35_v0  ;;  %v37_v6 = vld [vmem:[%s5161_s1 + $0x28] sm:$0xff]  ;;  %3986 = vmatprep.mubr.msk.f32.mxu0 %vm4422_vm1, %v4421_v2 }
   0x3   :  { %3990 = vmatpush3.msra.mxu1 %v39_v1  ;;  %3980 = vmatprep.subr.mxu0 %v4421_v2  ;;  %v32_v7 = vld [vmem:[%s5161_s1] sm:$0xff]  ;;  %v4503_v10 = vld [vmem:[%s5160_s0 + $0x8] sm:$0xff]  ;;  %v43_v11 = vld [vmem:[%s5161_s1 + $0x58] sm:$0xff] }
   0x4   :  { %3991 = vmatprep.subr.mxu1 %v4421_v2  ;;  %3981 = vmatpush3.msra.mxu0 %v34_v3  ;;  %v36_v8 = vld [vmem:[%s5161_s1 + $0x20] sm:$0xff]  ;;  %v47_v12 = vld [vmem:[%s5161_s1 + $0x78] sm:$0xff]  ;;  %v42_v13 = vld [vmem:[%s5161_s1 + $0x50] sm:$0xff] }
   0x5   :  { %3992 = vmatpush3.msra.mxu1 %v38_v4  ;;  %3982 = vmatprep.subr.mxu0 %v4421_v2  ;;  %v4494_v9 = vld [vmem:[%s5160_s0] sm:$0xff]  ;;  %v46_v14 = vld [vmem:[%s5161_s1 + $0x70] sm:$0xff]  ;;  %v41_v15 = vld [vmem:[%s5161_s1 + $0x48] sm:$0xff] }
   0x6   :  { %3993 = vmatprep.subr.mxu1 %v4421_v2  ;;  %3983 = vmatpush3.msra.mxu0 %v33_v5  ;;  %v45_v16 = vld [vmem:[%s5161_s1 + $0x68] sm:$0xff]  ;;  %v40_v17 = vld [vmem:[%s5161_s1 + $0x40] sm:$0xff]  ;;  %v4544_v19 = vld [vmem:[%s5160_s0 + $0x10] sm:$0xff] }
   0x7   :  { %3994 = vmatpush3.msra.mxu1 %v37_v6  ;;  %3984 = vmatprep.subr.mxu0 %v4421_v2  ;;  %v44_v18 = vld [vmem:[%s5161_s1 + $0x60] sm:$0xff]  ;;  %v4553_v20 = vld [vmem:[%s5160_s0 + $0x18] sm:$0xff]  ;;  %v50_v23 = vld [vmem:[%s5161_s1 + $0x90] sm:$0xff] }
   0x8   :  { %3995 = vmatprep.subr.mxu1 %v4421_v2  ;;  %3985 = vmatpush3.msra.mxu0 %v32_v7  ;;  %v51_v21 = vld [vmem:[%s5161_s1 + $0x98] sm:$0xff]  ;;  %v54_v24 = vld [vmem:[%s5161_s1 + $0xb0] sm:$0xff]  ;;  %v49_v25 = vld [vmem:[%s5161_s1 + $0x88] sm:$0xff] }
   0x9   :  { %3996 = vmatpush3.msra.mxu1 %v36_v8  ;;  %3987 = vmatmul.mubr.msk.f32.vlgmr.msra.gmra.mxu0 %vm64_vm0, %v4494_v9  ;;  %v55_v22 = vld [vmem:[%s5161_s1 + $0xb8] sm:$0xff]  ;;  %v53_v26 = vld [vmem:[%s5161_s1 + $0xa8] sm:$0xff] }
   0xa   :  { %3997 = vmatprep.mubr.msk.f32.mxu1 %vm4422_vm1, %v4421_v2  ;;  %4000 = vmatprep.subr.mxu0 %v4421_v2 }
   0xb   :  { %4011 = vmatprep.subr.mxu1 %v4421_v2  ;;  %3998 = vmatmul.mubr.msk.f32.vlgmr.msra.gmra.mxu1 %vm64_vm0, %v4503_v10 }
   0xc   :  { %4001 = vmatpush3.msra.mxu0 %v43_v11  ;;  %4012 = vmatpush3.msra.mxu1 %v47_v12 }
   0xd   :  { %4002 = vmatprep.subr.mxu0 %v4421_v2  ;;  %4013 = vmatprep.subr.mxu1 %v4421_v2 }
   0xe   :  { %4003 = vmatpush3.msra.mxu0 %v42_v13  ;;  %4014 = vmatpush3.msra.mxu1 %v46_v14 }
   0xf   :  { %4004 = vmatprep.subr.mxu0 %v4421_v2  ;;  %4015 = vmatprep.subr.mxu1 %v4421_v2 }
  0x10   :  { %4005 = vmatpush3.msra.mxu0 %v41_v15  ;;  %4016 = vmatpush3.msra.mxu1 %v45_v16 }
  0x11   :  { %4006 = vmatprep.subr.mxu0 %v4421_v2  ;;  %4017 = vmatprep.subr.mxu1 %v4421_v2 }
  0x12   :  { %4007 = vmatpush3.msra.mxu0 %v40_v17  ;;  %4008 = vmatprep.mubr.msk.f32.mxu0 %vm4422_vm1, %v4421_v2 }
  0x13   :  { %4018 = vmatpush3.msra.mxu1 %v44_v18  ;;  %4009 = vmatmul.mubr.msk.f32.vlgmr.msra.gmra.mxu0 %vm64_vm0, %v4544_v19 }
  0x14   :  { %4019 = vmatprep.mubr.msk.f32.mxu1 %vm4422_vm1, %v4421_v2  ;;  %4022 = vmatprep.subr.mxu0 %v4421_v2 }
  0x15   :  { %4033 = vmatprep.subr.mxu1 %v4421_v2  ;;  %4020 = vmatmul.mubr.msk.f32.vlgmr.msra.gmra.mxu1 %vm64_vm0, %v4553_v20 }
  0x16   :  { %4023 = vmatpush3.msra.mxu0 %v51_v21  ;;  %4034 = vmatpush3.msra.mxu1 %v55_v22 }
  0x17   :  { %4024 = vmatprep.subr.mxu0 %v4421_v2  ;;  %4035 = vmatprep.subr.mxu1 %v4421_v2 }
  0x18   :  { %4025 = vmatpush3.msra.mxu0 %v50_v23  ;;  %4036 = vmatpush3.msra.mxu1 %v54_v24 }
  0x19   :  { %11 = vsyncpa [#allocation3], 0  ;;  %4026 = vmatprep.subr.mxu0 %v4421_v2  ;;  %4037 = vmatprep.subr.mxu1 %v4421_v2  ;;  %v48_v27 = vld [vmem:[%s5161_s1 + $0x80] sm:$0xff]  ;;  %v4603_v30 = vld [vmem:[%s5160_s0 + $0x28] sm:$0xff]  ;;  %vm1839_vm2 = vcmask 64512  }
  0x1a   :  { %4027 = vmatpush3.msra.mxu0 %v49_v25  ;;  %4038 = vmatpush3.msra.mxu1 %v53_v26  ;;  %v52_v28 = vld [vmem:[%s5161_s1 + $0xa0] sm:$0xff]  ;;  %v59_v31 = vld [vmem:[%s5161_s1 + $0xd8] sm:$0xff]  ;;  %v58_v33 = vld [vmem:[%s5161_s1 + $0xd0] sm:$0xff] }
  0x1b   :  { %v4594_v29 = vld [vmem:[%s5160_s0 + $0x20] sm:$0xff]  ;;  %4028 = vmatprep.subr.mxu0 %v4421_v2  ;;  %4039 = vmatprep.subr.mxu1 %v4421_v2  ;;  %v63_v32 = vld [vmem:[%s5161_s1 + $0xf8] sm:$0xff]  ;;  %v62_v34 = vld [vmem:[%s5161_s1 + $0xf0] sm:$0xff] }
  0x1c   :  { %4029 = vmatpush3.msra.mxu0 %v48_v27  ;;  %4030 = vmatprep.mubr.msk.f32.mxu0 %vm4422_vm1, %v4421_v2  ;;  %v57_v35 = vld [vmem:[%s5161_s1 + $0xc8] sm:$0xff]  ;;  %v56_v37 = vld [vmem:[%s5161_s1 + $0xc0] sm:$0xff]  ;;  %v4644_v39 = vld [vmem:[%s5160_s0 + $0x30] sm:$0xff] }
  0x1d   :  { %4040 = vmatpush3.msra.mxu1 %v52_v28  ;;  %4031 = vmatmul.mubr.msk.f32.vlgmr.msra.gmra.mxu0 %vm64_vm0, %v4594_v29  ;;  %v61_v36 = vld [vmem:[%s5161_s1 + $0xe8] sm:$0xff]  ;;  %v60_v38 = vld [vmem:[%s5161_s1 + $0xe0] sm:$0xff]  ;;  %v4653_v40 = vld [vmem:[%s5160_s0 + $0x38] sm:$0xff] }
  0x1e   :  { %4041 = vmatprep.mubr.msk.f32.mxu1 %vm4422_vm1, %v4421_v2  ;;  %4044 = vmatprep.subr.mxu0 %v4421_v2  ;;  %v652_v41 = vld [vmem:[%s5162_s2 + $0x18] sm:$0xff]  ;;  %v651_v43 = vld [vmem:[%s5162_s2 + $0x10] sm:$0xff]  ;;  %v650_v45 = vld [vmem:[%s5162_s2 + $0x8] sm:$0xff] }
  0x1f   :  { %4055 = vmatprep.subr.mxu1 %v4421_v2  ;;  %4042 = vmatmul.mubr.msk.f32.vlgmr.msra.gmra.mxu1 %vm64_vm0, %v4603_v30  ;;  %v656_v42 = vld [vmem:[%s5162_s2 + $0x38] sm:$0xff]  ;;  %v655_v44 = vld [vmem:[%s5162_s2 + $0x30] sm:$0xff]  ;;  %v654_v46 = vld [vmem:[%s5162_s2 + $0x28] sm:$0xff] }
  0x20   :  { %4045 = vmatpush3.msra.mxu0 %v59_v31  ;;  %4056 = vmatpush3.msra.mxu1 %v63_v32  ;;  %v649_v47 = vld [vmem:[%s5162_s2] sm:$0xff]  ;;  %v660_v49 = vld [vmem:[%s5162_s2 + $0x58] sm:$0xff]  ;;  %v659_v51 = vld [vmem:[%s5162_s2 + $0x50] sm:$0xff] }
  0x21   :  { %4046 = vmatprep.subr.mxu0 %v4421_v2  ;;  %4057 = vmatprep.subr.mxu1 %v4421_v2  ;;  %v653_v48 = vld [vmem:[%s5162_s2 + $0x20] sm:$0xff]  ;;  %v664_v50 = vld [vmem:[%s5162_s2 + $0x78] sm:$0xff]  ;;  %v663_v52 = vld [vmem:[%s5162_s2 + $0x70] sm:$0xff] }
  0x22   :  { %4047 = vmatpush3.msra.mxu0 %v58_v33  ;;  %4058 = vmatpush3.msra.mxu1 %v62_v34  ;;  %v658_v53 = vld [vmem:[%s5162_s2 + $0x48] sm:$0xff]  ;;  %v657_v55 = vld [vmem:[%s5162_s2 + $0x40] sm:$0xff]  ;;  %v668_v57 = vld [vmem:[%s5162_s2 + $0x98] sm:$0xff] }
  0x23   :  { %4048 = vmatprep.subr.mxu0 %v4421_v2  ;;  %4059 = vmatprep.subr.mxu1 %v4421_v2  ;;  %v662_v54 = vld [vmem:[%s5162_s2 + $0x68] sm:$0xff]  ;;  %v661_v56 = vld [vmem:[%s5162_s2 + $0x60] sm:$0xff]  ;;  %v672_v58 = vld [vmem:[%s5162_s2 + $0xb8] sm:$0xff] }
  0x24   :  { %4049 = vmatpush3.msra.mxu0 %v57_v35  ;;  %4060 = vmatpush3.msra.mxu1 %v61_v36  ;;  %v667_v59 = vld [vmem:[%s5162_s2 + $0x90] sm:$0xff]  ;;  %v666_v61 = vld [vmem:[%s5162_s2 + $0x88] sm:$0xff]  ;;  %v665_v63 = vld [vmem:[%s5162_s2 + $0x80] sm:$0xff] }
  0x25   :  { %4050 = vmatprep.subr.mxu0 %v4421_v2  ;;  %4061 = vmatprep.subr.mxu1 %v4421_v2  ;;  %v671_v60 = vld [vmem:[%s5162_s2 + $0xb0] sm:$0xff]  ;;  %v670_v62 = vld [vmem:[%s5162_s2 + $0xa8] sm:$0xff]  ;;  %v669_v0 = vld [vmem:[%s5162_s2 + $0xa0] sm:$0xff] }
  0x26   :  { %4051 = vmatpush3.msra.mxu0 %v56_v37  ;;  %4052 = vmatprep.mubr.msk.f32.mxu0 %vm4422_vm1, %v4421_v2  ;;  %v676_v1 = vld [vmem:[%s5162_s2 + $0xd8] sm:$0xff]  ;;  %v675_v4 = vld [vmem:[%s5162_s2 + $0xd0] sm:$0xff]  ;;  %v674_v6 = vld [vmem:[%s5162_s2 + $0xc8] sm:$0xff] }
  0x27   :  { %4062 = vmatpush3.msra.mxu1 %v60_v38  ;;  %4053 = vmatmul.mubr.msk.f32.vlgmr.msra.gmra.mxu0 %vm64_vm0, %v4644_v39  ;;  %v680_v3 = vld [vmem:[%s5162_s2 + $0xf8] sm:$0xff]  ;;  %v679_v5 = vld [vmem:[%s5162_s2 + $0xf0] sm:$0xff]  ;;  %v678_v7 = vld [vmem:[%s5162_s2 + $0xe8] sm:$0xff] }
  0x28   :  { %4063 = vmatprep.mubr.msk.f32.mxu1 %vm4422_vm1, %v4421_v2  ;;  %4066 = vmatprep.subr.mxu0 %v4421_v2  ;;  %v673_v8 = vld [vmem:[%s5162_s2 + $0xc0] sm:$0xff]  ;;  %v1244_v12 = vld [vmem:[%s5163_s3 + $0x18] sm:$0xff]  ;;  %v1243_v14 = vld [vmem:[%s5163_s3 + $0x10] sm:$0xff] }
  0x29   :  { %4077 = vmatprep.subr.mxu1 %v4421_v2  ;;  %4064 = vmatmul.mubr.msk.f32.vlgmr.msra.gmra.mxu1 %vm64_vm0, %v4653_v40  ;;  %v677_v11 = vld [vmem:[%s5162_s2 + $0xe0] sm:$0xff]  ;;  %v1248_v13 = vld [vmem:[%s5163_s3 + $0x38] sm:$0xff]  ;;  %v1247_v15 = vld [vmem:[%s5163_s3 + $0x30] sm:$0xff] }
  0x2a   :  { %4067 = vmatpush3.msra.mxu0 %v652_v41  ;;  %4078 = vmatpush3.msra.mxu1 %v656_v42  ;;  %v1242_v16 = vld [vmem:[%s5163_s3 + $0x8] sm:$0xff]  ;;  %v1241_v18 = vld [vmem:[%s5163_s3] sm:$0xff]  ;;  %v1252_v22 = vld [vmem:[%s5163_s3 + $0x58] sm:$0xff] }
  0x2b   :  { %4068 = vmatprep.subr.mxu0 %v4421_v2  ;;  %4079 = vmatprep.subr.mxu1 %v4421_v2  ;;  %v1246_v17 = vld [vmem:[%s5163_s3 + $0x28] sm:$0xff]  ;;  %v1245_v21 = vld [vmem:[%s5163_s3 + $0x20] sm:$0xff]  ;;  %v1256_v23 = vld [vmem:[%s5163_s3 + $0x78] sm:$0xff] }
  0x2c   :  { %4069 = vmatpush3.msra.mxu0 %v651_v43  ;;  %4080 = vmatpush3.msra.mxu1 %v655_v44  ;;  %v1251_v24 = vld [vmem:[%s5163_s3 + $0x50] sm:$0xff]  ;;  %v1249_v26 = vld [vmem:[%s5163_s3 + $0x40] sm:$0xff]  ;;  %v1260_v28 = vld [vmem:[%s5163_s3 + $0x98] sm:$0xff] }
  0x2d   :  { %4070 = vmatprep.subr.mxu0 %v4421_v2  ;;  %4081 = vmatprep.subr.mxu1 %v4421_v2  ;;  %v1255_v25 = vld [vmem:[%s5163_s3 + $0x70] sm:$0xff]  ;;  %v1253_v27 = vld [vmem:[%s5163_s3 + $0x60] sm:$0xff]  ;;  %v1264_v31 = vld [vmem:[%s5163_s3 + $0xb8] sm:$0xff] }
  0x2e   :  { %4071 = vmatpush3.msra.mxu0 %v650_v45  ;;  %4082 = vmatpush3.msra.mxu1 %v654_v46  ;;  %v1259_v32 = vld [vmem:[%s5163_s3 + $0x90] sm:$0xff]  ;;  %v1257_v34 = vld [vmem:[%s5163_s3 + $0x80] sm:$0xff]  ;;  %v1268_v36 = vld [vmem:[%s5163_s3 + $0xd8] sm:$0xff] }
  0x2f   :  { %4072 = vmatprep.subr.mxu0 %v4421_v2  ;;  %4083 = vmatprep.subr.mxu1 %v4421_v2  ;;  %v1263_v33 = vld [vmem:[%s5163_s3 + $0xb0] sm:$0xff]  ;;  %v1261_v35 = vld [vmem:[%s5163_s3 + $0xa0] sm:$0xff]  ;;  %v1272_v37 = vld [vmem:[%s5163_s3 + $0xf8] sm:$0xff] }
  0x30   :  { %4073 = vmatpush3.msra.mxu0 %v649_v47  ;;  %4074 = vmatprep.mubr.msk.f32.mxu0 %vm4422_vm1, %v4421_v2  ;;  %v1267_v38 = vld [vmem:[%s5163_s3 + $0xd0] sm:$0xff]  ;;  %v1265_v42 = vld [vmem:[%s5163_s3 + $0xc0] sm:$0xff] }
  0x31   :  { %4084 = vmatpush3.msra.mxu1 %v653_v48  ;;  %4085 = vmatprep.mubr.msk.f32.mxu1 %vm4422_vm1, %v4421_v2  ;;  %v1271_v41 = vld [vmem:[%s5163_s3 + $0xf0] sm:$0xff]  ;;  %v1269_v43 = vld [vmem:[%s5163_s3 + $0xe0] sm:$0xff] }
  0x32   :  { %4075 = vmatmul.mubr.msk.f32.vlgmr.msra.gmra.mxu0 %vm64_vm0, %v4494_v9  ;;  %4086 = vmatmul.mubr.msk.f32.vlgmr.msra.gmra.mxu1 %vm64_vm0, %v4503_v10 }
  0x33   :  { %4088 = vmatprep.subr.mxu0 %v4421_v2  ;;  %4099 = vmatprep.subr.mxu1 %v4421_v2 }
  0x34   :  { %4089 = vmatpush3.msra.mxu0 %v660_v49  ;;  %4100 = vmatpush3.msra.mxu1 %v664_v50 }
  0x35   :  { %4090 = vmatprep.subr.mxu0 %v4421_v2  ;;  %4101 = vmatprep.subr.mxu1 %v4421_v2 }
  0x36   :  { %4091 = vmatpush3.msra.mxu0 %v659_v51  ;;  %4102 = vmatpush3.msra.mxu1 %v663_v52 }
  0x37   :  { %4092 = vmatprep.subr.mxu0 %v4421_v2  ;;  %4103 = vmatprep.subr.mxu1 %v4421_v2 }
  0x38   :  { %4093 = vmatpush3.msra.mxu0 %v658_v53  ;;  %4104 = vmatpush3.msra.mxu1 %v662_v54 }
  0x39   :  { %4094 = vmatprep.subr.mxu0 %v4421_v2  ;;  %4105 = vmatprep.subr.mxu1 %v4421_v2 }
  0x3a   :  { %4095 = vmatpush3.msra.mxu0 %v657_v55  ;;  %4096 = vmatprep.mubr.msk.f32.mxu0 %vm4422_vm1, %v4421_v2 }
  0x3b   :  { %4106 = vmatpush3.msra.mxu1 %v661_v56  ;;  %4107 = vmatprep.mubr.msk.f32.mxu1 %vm4422_vm1, %v4421_v2 }
  0x3c   :  { %4097 = vmatmul.mubr.msk.f32.vlgmr.msra.gmra.mxu0 %vm64_vm0, %v4544_v19  ;;  %4108 = vmatmul.mubr.msk.f32.vlgmr.msra.gmra.mxu1 %vm64_vm0, %v4553_v20 }
  0x3d   :  { %4110 = vmatprep.subr.mxu0 %v4421_v2  ;;  %4121 = vmatprep.subr.mxu1 %v4421_v2 }
  0x3e   :  { %4111 = vmatpush3.msra.mxu0 %v668_v57  ;;  %4122 = vmatpush3.msra.mxu1 %v672_v58 }
  0x3f   :  { %4112 = vmatprep.subr.mxu0 %v4421_v2  ;;  %4123 = vmatprep.subr.mxu1 %v4421_v2 }
  0x40   :  { %4113 = vmatpush3.msra.mxu0 %v667_v59  ;;  %4124 = vmatpush3.msra.mxu1 %v671_v60 }
  0x41   :  { %4114 = vmatprep.subr.mxu0 %v4421_v2  ;;  %4125 = vmatprep.subr.mxu1 %v4421_v2 }
  0x42   :  { %4115 = vmatpush3.msra.mxu0 %v666_v61  ;;  %4126 = vmatpush3.msra.mxu1 %v670_v62 }
  0x43   :  { %4116 = vmatprep.subr.mxu0 %v4421_v2  ;;  %4127 = vmatprep.subr.mxu1 %v4421_v2 }
  0x44   :  { %4117 = vmatpush3.msra.mxu0 %v665_v63  ;;  %4118 = vmatprep.mubr.msk.f32.mxu0 %vm4422_vm1, %v4421_v2 }
  0x45   :  { %4128 = vmatpush3.msra.mxu1 %v669_v0  ;;  %4129 = vmatprep.mubr.msk.f32.mxu1 %vm4422_vm1, %v4421_v2 }
  0x46   :  { %4119 = vmatmul.mubr.msk.f32.vlgmr.msra.gmra.mxu0 %vm64_vm0, %v4594_v29  ;;  %4130 = vmatmul.mubr.msk.f32.vlgmr.msra.gmra.mxu1 %vm64_vm0, %v4603_v30 }
  0x47   :  { %4132 = vmatprep.subr.mxu0 %v4421_v2  ;;  %4143 = vmatprep.subr.mxu1 %v4421_v2 }
  0x48   :  { %4133 = vmatpush3.msra.mxu0 %v676_v1  ;;  %4144 = vmatpush3.msra.mxu1 %v680_v3 }
  0x49   :  { %4134 = vmatprep.subr.mxu0 %v4421_v2  ;;  %4145 = vmatprep.subr.mxu1 %v4421_v2 }
  0x4a   :  { %4135 = vmatpush3.msra.mxu0 %v675_v4  ;;  %4146 = vmatpush3.msra.mxu1 %v679_v5 }
  0x4b   :  { %4136 = vmatprep.subr.mxu0 %v4421_v2  ;;  %4147 = vmatprep.subr.mxu1 %v4421_v2 }
  0x4c   :  { %4137 = vmatpush3.msra.mxu0 %v674_v6  ;;  %4148 = vmatpush3.msra.mxu1 %v678_v7 }
  0x4d   :  { %4138 = vmatprep.subr.mxu0 %v4421_v2  ;;  %4149 = vmatprep.subr.mxu1 %v4421_v2 }
  0x4e   :  { %4139 = vmatpush3.msra.mxu0 %v673_v8  ;;  %4140 = vmatprep.mubr.msk.f32.mxu0 %vm4422_vm1, %v4421_v2 }
  0x4f   :  { %4150 = vmatpush3.msra.mxu1 %v677_v11  ;;  %4151 = vmatprep.mubr.msk.f32.mxu1 %vm4422_vm1, %v4421_v2 }
  0x50   :  { %4141 = vmatmul.mubr.msk.f32.vlgmr.msra.gmra.mxu0 %vm64_vm0, %v4644_v39  ;;  %4152 = vmatmul.mubr.msk.f32.vlgmr.msra.gmra.mxu1 %vm64_vm0, %v4653_v40 }
  0x51   :  { %4154 = vmatprep.subr.mxu0 %v4421_v2  ;;  %4165 = vmatprep.subr.mxu1 %v4421_v2 }
  0x52   :  { %4155 = vmatpush3.msra.mxu0 %v1244_v12  ;;  %4166 = vmatpush3.msra.mxu1 %v1248_v13 }
  0x53   :  { %4156 = vmatprep.subr.mxu0 %v4421_v2  ;;  %4167 = vmatprep.subr.mxu1 %v4421_v2 }
  0x54   :  { %4157 = vmatpush3.msra.mxu0 %v1243_v14  ;;  %4168 = vmatpush3.msra.mxu1 %v1247_v15 }
  0x55   :  { %4158 = vmatprep.subr.mxu0 %v4421_v2  ;;  %4169 = vmatprep.subr.mxu1 %v4421_v2 }
  0x56   :  { %4159 = vmatpush3.msra.mxu0 %v1242_v16  ;;  %4170 = vmatpush3.msra.mxu1 %v1246_v17 }
  0x57   :  { %4160 = vmatprep.subr.mxu0 %v4421_v2  ;;  %4171 = vmatprep.subr.mxu1 %v4421_v2 }
  0x58   :  { %4161 = vmatpush3.msra.mxu0 %v1241_v18  ;;  %4172 = vmatpush3.msra.mxu1 %v1245_v21 }
  0x59   :  { %4162 = vmatprep.mubr.msk.f32.mxu0 %vm4422_vm1, %v4421_v2  ;;  %4173 = vmatprep.mubr.msk.f32.mxu1 %vm4422_vm1, %v4421_v2 }
  0x5a   :  { %4176 = vmatprep.subr.mxu0 %v4421_v2  ;;  %4187 = vmatprep.subr.mxu1 %v4421_v2 }
  0x5b   :  { %4163 = vmatmul.mubr.msk.f32.vlgmr.msra.gmra.mxu0 %vm64_vm0, %v4494_v9  ;;  %4174 = vmatmul.mubr.msk.f32.vlgmr.msra.gmra.mxu1 %vm64_vm0, %v4503_v10  ;;  %v1250_v9 = vld [vmem:[%s5163_s3 + $0x48] sm:$0xff] }
  0x5c   :  { %4177 = vmatpush3.msra.mxu0 %v1252_v22  ;;  %4188 = vmatpush3.msra.mxu1 %v1256_v23  ;;  %v1254_v10 = vld [vmem:[%s5163_s3 + $0x68] sm:$0xff] }
  0x5d   :  { %4178 = vmatprep.subr.mxu0 %v4421_v2  ;;  %4189 = vmatprep.subr.mxu1 %v4421_v2 }
  0x5e   :  { %4179 = vmatpush3.msra.mxu0 %v1251_v24  ;;  %4190 = vmatpush3.msra.mxu1 %v1255_v25 }
  0x5f   :  { %4180 = vmatprep.subr.mxu0 %v4421_v2  ;;  %4191 = vmatprep.subr.mxu1 %v4421_v2 }
  0x60   :  { %4181 = vmatpush3.msra.mxu0 %v1250_v9  ;;  %4192 = vmatpush3.msra.mxu1 %v1254_v10 }
  0x61   :  { %4182 = vmatprep.subr.mxu0 %v4421_v2  ;;  %4193 = vmatprep.subr.mxu1 %v4421_v2 }
  0x62   :  { %4183 = vmatpush3.msra.mxu0 %v1249_v26  ;;  %4194 = vmatpush3.msra.mxu1 %v1253_v27 }
  0x63   :  { %4184 = vmatprep.mubr.msk.f32.mxu0 %vm4422_vm1, %v4421_v2  ;;  %4195 = vmatprep.mubr.msk.f32.mxu1 %vm4422_vm1, %v4421_v2 }
  0x64   :  { %4198 = vmatprep.subr.mxu0 %v4421_v2  ;;  %4209 = vmatprep.subr.mxu1 %v4421_v2 }
  0x65   :  { %4185 = vmatmul.mubr.msk.f32.vlgmr.msra.gmra.mxu0 %vm64_vm0, %v4544_v19  ;;  %4196 = vmatmul.mubr.msk.f32.vlgmr.msra.gmra.mxu1 %vm64_vm0, %v4553_v20  ;;  %v1258_v19 = vld [vmem:[%s5163_s3 + $0x88] sm:$0xff] }
  0x66   :  { %4199 = vmatpush3.msra.mxu0 %v1260_v28  ;;  %4210 = vmatpush3.msra.mxu1 %v1264_v31  ;;  %v1262_v20 = vld [vmem:[%s5163_s3 + $0xa8] sm:$0xff]  ;;  %v1833_v31 = vlaneseq }
  0x67   :  { %4200 = vmatprep.subr.mxu0 %v4421_v2  ;;  %4211 = vmatprep.subr.mxu1 %v4421_v2 }
  0x68   :  { %4201 = vmatpush3.msra.mxu0 %v1259_v32  ;;  %4212 = vmatpush3.msra.mxu1 %v1263_v33  ;;  %v1834_v32 = vshrl.u32 %v1833_v31, 7  ;;  %v1836_v33 = vand.u32 127, %v1833_v31 }
  0x69   :  { %4202 = vmatprep.subr.mxu0 %v4421_v2  ;;  %4213 = vmatprep.subr.mxu1 %v4421_v2 }
  0x6a   :  { %4203 = vmatpush3.msra.mxu0 %v1258_v19  ;;  %4214 = vmatpush3.msra.mxu1 %v1262_v20  ;;  %vm1837_vm3 = vcmp.gt.s32.totalorder %v1836_v33, %v1834_v32 }
  0x6b   :  { %4204 = vmatprep.subr.mxu0 %v4421_v2  ;;  %4215 = vmatprep.subr.mxu1 %v4421_v2  ;;  %v1838_v19 = vsel %vm1837_vm3, -1e+30, %v4421_v2 }
  0x6c   :  { %4205 = vmatpush3.msra.mxu0 %v1257_v34  ;;  %4216 = vmatpush3.msra.mxu1 %v1261_v35 }
  0x6d   :  { %4206 = vmatprep.mubr.msk.f32.mxu0 %vm4422_vm1, %v4421_v2  ;;  %4217 = vmatprep.mubr.msk.f32.mxu1 %vm4422_vm1, %v4421_v2 }
  0x6e   :  { %4220 = vmatprep.subr.mxu0 %v4421_v2  ;;  %4231 = vmatprep.subr.mxu1 %v4421_v2 }
  0x6f   :  { %4207 = vmatmul.mubr.msk.f32.vlgmr.msra.gmra.mxu0 %vm64_vm0, %v4594_v29  ;;  %4218 = vmatmul.mubr.msk.f32.vlgmr.msra.gmra.mxu1 %vm64_vm0, %v4603_v30  ;;  %v1266_v29 = vld [vmem:[%s5163_s3 + $0xc8] sm:$0xff] }
  0x70   :  { %4221 = vmatpush3.msra.mxu0 %v1268_v36  ;;  %4232 = vmatpush3.msra.mxu1 %v1272_v37  ;;  %v1270_v30 = vld [vmem:[%s5163_s3 + $0xe8] sm:$0xff] }
  0x71   :  { %4222 = vmatprep.subr.mxu0 %v4421_v2  ;;  %4233 = vmatprep.subr.mxu1 %v4421_v2 }
  0x72   :  { %4223 = vmatpush3.msra.mxu0 %v1267_v38  ;;  %4234 = vmatpush3.msra.mxu1 %v1271_v41 }
  0x73   :  { %4224 = vmatprep.subr.mxu0 %v4421_v2  ;;  %4235 = vmatprep.subr.mxu1 %v4421_v2 }
  0x74   :  { %4225 = vmatpush3.msra.mxu0 %v1266_v29  ;;  %4236 = vmatpush3.msra.mxu1 %v1270_v30 }
  0x75   :  { %4226 = vmatprep.subr.mxu0 %v4421_v2  ;;  %4237 = vmatprep.subr.mxu1 %v4421_v2 }
  0x76   :  { %4227 = vmatpush3.msra.mxu0 %v1265_v42  ;;  %4228 = vmatprep.mubr.msk.f32.mxu0 %vm4422_vm1, %v4421_v2 }
  0x77   :  { %4238 = vmatpush3.msra.mxu1 %v1269_v43  ;;  %4239 = vmatprep.mubr.msk.f32.mxu1 %vm4422_vm1, %v4421_v2 }
  0x78   :  { %4229 = vmatmul.mubr.msk.f32.vlgmr.msra.gmra.mxu0 %vm64_vm0, %v4644_v39  ;;  %4240 = vmatmul.mubr.msk.f32.vlgmr.msra.gmra.mxu1 %vm64_vm0, %v4653_v40 }
  0x79   :  { %4242 = vmatprep.subr.mxu0 %v4421_v2  ;;  %4247 = vmatprep.subr.mxu1 %v4421_v2 }
  0x7a   :  { %4244 = vmatprep.mubr.msk.f32.mxu0 %vm4422_vm1, %v4421_v2  ;;  %4249 = vmatprep.mubr.msk.f32.mxu1 %vm4422_vm1, %v4421_v2 }
  0xc9   :  { %v134_v44 = vpop.f32.mrf.mxu0 }
  0xcb   :  { %v207_v45 = vpop.f32.mrf.mxu1  ;;  %v3988_v46 = vpop.f32.mrf.mxu0 }
  0xcd   :  { %v3999_v47 = vpop.f32.mrf.mxu1 }
  0xd3   :  { %v280_v48 = vpop.f32.mrf.mxu0 }
  0xd5   :  { %v353_v49 = vpop.f32.mrf.mxu1  ;;  %v4010_v39 = vpop.f32.mrf.mxu0 }
  0xd7   :  { %v4021_v50 = vpop.f32.mrf.mxu1 }
  0xdd   :  { %v426_v51 = vpop.f32.mrf.mxu0 }
  0xdf   :  { %v499_v40 = vpop.f32.mrf.mxu1  ;;  %v4032_v52 = vpop.f32.mrf.mxu0 }
  0xe1   :  { %v4043_v53 = vpop.f32.mrf.mxu1 }
  0xe7   :  { %v572_v54 = vpop.f32.mrf.mxu0 }
  0xe9   :  { %v645_v55 = vpop.f32.mrf.mxu1  ;;  %v4054_v56 = vpop.f32.mrf.mxu0 }
  0xeb   :  { %v4065_v57 = vpop.f32.mrf.mxu1 }
  0xf2   :  { %v747_v58 = vpop.f32.mrf.mxu0  ;;  %v817_v59 = vpop.f32.mrf.mxu1 }
  0xf3   :  { %4243 = vmatpush3.xpose.msk.msra.mxu0 %vm1839_vm2, %v747_v58  ;;  %4248 = vmatpush3.xpose.msk.msra.mxu1 %vm1839_vm2, %v817_v59 }
  0xf4   :  { %v4076_v60 = vpop.f32.mrf.mxu0  ;;  %v4087_v61 = vpop.f32.mrf.mxu1  ;;  %4252 = vmatprep.subr.mxu0 %v4421_v2  ;;  %4257 = vmatprep.subr.mxu1 %v4421_v2 }
  0xf6   :  { %4245 = vmatmul.mubr.msk.f32.vlgmr.msra.gmra.mxu0 %vm1839_vm2, %v134_v44  ;;  %4250 = vmatmul.mubr.msk.f32.vlgmr.msra.gmra.mxu1 %vm1839_vm2, %v207_v45 }
  0xf7   :  { %4254 = vmatprep.mubr.msk.f32.mxu0 %vm4422_vm1, %v4421_v2  ;;  %4259 = vmatprep.mubr.msk.f32.mxu1 %vm4422_vm1, %v4421_v2 }
  0xfc   :  { %v887_v62 = vpop.f32.mrf.mxu0  ;;  %v957_v63 = vpop.f32.mrf.mxu1 }
  0xfd   :  { %4253 = vmatpush3.xpose.msk.msra.mxu0 %vm1839_vm2, %v887_v62  ;;  %4258 = vmatpush3.xpose.msk.msra.mxu1 %vm1839_vm2, %v957_v63 }
  0xfe   :  { %v4098_v0 = vpop.f32.mrf.mxu0  ;;  %v4109_v1 = vpop.f32.mrf.mxu1  ;;  %4262 = vmatprep.subr.mxu0 %v4421_v2  ;;  %4267 = vmatprep.subr.mxu1 %v4421_v2 }
 0x100   :  { %4255 = vmatmul.mubr.msk.f32.vlgmr.msra.gmra.mxu0 %vm1839_vm2, %v280_v48  ;;  %4260 = vmatmul.mubr.msk.f32.vlgmr.msra.gmra.mxu1 %vm1839_vm2, %v353_v49 }
 0x101   :  { %4264 = vmatprep.mubr.msk.f32.mxu0 %vm4422_vm1, %v4421_v2  ;;  %4269 = vmatprep.mubr.msk.f32.mxu1 %vm4422_vm1, %v4421_v2 }
 0x106   :  { %v1027_v3 = vpop.f32.mrf.mxu0  ;;  %v1097_v4 = vpop.f32.mrf.mxu1 }
 0x107   :  { %4263 = vmatpush3.xpose.msk.msra.mxu0 %vm1839_vm2, %v1027_v3  ;;  %4268 = vmatpush3.xpose.msk.msra.mxu1 %vm1839_vm2, %v1097_v4 }
 0x108   :  { %v4120_v5 = vpop.f32.mrf.mxu0  ;;  %v4131_v6 = vpop.f32.mrf.mxu1  ;;  %4272 = vmatprep.subr.mxu0 %v4421_v2  ;;  %4277 = vmatprep.subr.mxu1 %v4421_v2 }
 0x10a   :  { %4265 = vmatmul.mubr.msk.f32.vlgmr.msra.gmra.mxu0 %vm1839_vm2, %v426_v51  ;;  %4270 = vmatmul.mubr.msk.f32.vlgmr.msra.gmra.mxu1 %vm1839_vm2, %v499_v40 }
 0x10b   :  { %4274 = vmatprep.mubr.msk.f32.mxu0 %vm4422_vm1, %v4421_v2  ;;  %4279 = vmatprep.mubr.msk.f32.mxu1 %vm4422_vm1, %v4421_v2 }
 0x110   :  { %v1167_v7 = vpop.f32.mrf.mxu0  ;;  %v1237_v8 = vpop.f32.mrf.mxu1 }
 0x111   :  { %4273 = vmatpush3.xpose.msk.msra.mxu0 %vm1839_vm2, %v1167_v7  ;;  %4278 = vmatpush3.xpose.msk.msra.mxu1 %vm1839_vm2, %v1237_v8 }
 0x112   :  { %v4142_v11 = vpop.f32.mrf.mxu0  ;;  %v4153_v12 = vpop.f32.mrf.mxu1  ;;  %4282 = vmatprep.subr.mxu0 %v4421_v2  ;;  %4287 = vmatprep.subr.mxu1 %v4421_v2 }
 0x114   :  { %4275 = vmatmul.mubr.msk.f32.vlgmr.msra.gmra.mxu0 %vm1839_vm2, %v572_v54  ;;  %4280 = vmatmul.mubr.msk.f32.vlgmr.msra.gmra.mxu1 %vm1839_vm2, %v645_v55 }
 0x115   :  { %4284 = vmatprep.mubr.msk.f32.mxu0 %vm4422_vm1, %v4421_v2  ;;  %4289 = vmatprep.mubr.msk.f32.mxu1 %vm4422_vm1, %v4421_v2 }
 0x11b   :  { %v1339_v13 = vpop.f32.mrf.mxu0  ;;  %v1409_v14 = vpop.f32.mrf.mxu1 }
 0x11c   :  { %4283 = vmatpush3.msra.mxu0 %v1339_v13  ;;  %4288 = vmatpush3.msra.mxu1 %v1409_v14 }
 0x11d   :  { %v4164_v15 = vpop.f32.mrf.mxu0  ;;  %v4175_v16 = vpop.f32.mrf.mxu1  ;;  %4292 = vmatprep.subr.mxu0 %v4421_v2  ;;  %4297 = vmatprep.subr.mxu1 %v4421_v2 }
 0x125   :  { %v5029_v17 = vpop.f32.mrf.mxu0  ;;  %v5031_v18 = vpop.f32.mrf.mxu1 }
 0x127   :  { %v4186_v21 = vpop.f32.mrf.mxu0  ;;  %v4197_v22 = vpop.f32.mrf.mxu1 }
 0x12f   :  { %v5033_v23 = vpop.f32.mrf.mxu0  ;;  %v5035_v24 = vpop.f32.mrf.mxu1 }
 0x131   :  { %v4208_v25 = vpop.f32.mrf.mxu0  ;;  %v4219_v9 = vpop.f32.mrf.mxu1 }
 0x138   :  { %v5037_v10 = vpop.f32.mrf.mxu0  ;;  %v5039_v26 = vpop.f32.mrf.mxu1 }
 0x13a   :  { %v4230_v27 = vpop.f32.mrf.mxu0  ;;  %v4241_v28 = vpop.f32.mrf.mxu1 }
 0x1b6   :  { %v1912_v20 = vpop.f32.mrf.mxu0  ;;  %v1988_v34 = vpop.f32.mrf.mxu1 }
 0x1b7   :  { %v1913_v35 = vadd.f32 %v1912_v20, %v1838_v19  ;;  %v1989_v38 = vadd.f32 %v1988_v34, %v1838_v19 }
 0x1b8   :  { %v4246_v36 = vpop.f32.mrf.mxu0  ;;  %v4251_v37 = vpop.f32.mrf.mxu1 }
 0x1b9   :  { %v2448_v41 = vsel %vm1839_vm2, %v1913_v35, -inf  ;;  %v2451_v29 = vsel %vm1839_vm2, %v1989_v38, -inf }
 0x1ba   :  { %2449 = vmax.xlane.f32.xlu0 %v2448_v41 }
 0x1be   :  { %2452 = vmax.xlane.f32.xlu0 %v2451_v29 }
 0x1c0   :  { %v2140_v30 = vpop.f32.mrf.mxu1  ;;  %v2064_v42 = vpop.f32.mrf.mxu0 }
 0x1c1   :  { %v2065_v43 = vadd.f32 %v2064_v42, %v1838_v19  ;;  %v2141_v46 = vadd.f32 %v2140_v30, %v1838_v19 }
 0x1c2   :  { %v4256_v44 = vpop.f32.mrf.mxu0  ;;  %v4261_v45 = vpop.f32.mrf.mxu1 }
 0x1c3   :  { %v2454_v47 = vsel %vm1839_vm2, %v2065_v43, -inf  ;;  %v2457_v48 = vsel %vm1839_vm2, %v2141_v46, -inf }
 0x1c4   :  { %2455 = vmax.xlane.f32.xlu1 %v2454_v47 }
 0x1c8   :  { %2458 = vmax.xlane.f32.xlu1 %v2457_v48 }
 0x1ca   :  { %v2292_v49 = vpop.f32.mrf.mxu1  ;;  %v2216_v39 = vpop.f32.mrf.mxu0 }
 0x1cb   :  { %v2293_v50 = vadd.f32 %v2292_v49, %v1838_v19  ;;  %v2217_v51 = vadd.f32 %v2216_v39, %v1838_v19 }
 0x1cc   :  { %v4266_v40 = vpop.f32.mrf.mxu0  ;;  %v4271_v52 = vpop.f32.mrf.mxu1 }
 0x1cd   :  { %v2463_v53 = vsel %vm1839_vm2, %v2293_v50, -inf  ;;  %v2460_v54 = vsel %vm1839_vm2, %v2217_v51, -inf }
 0x1ce   :  { %2464 = vmax.xlane.f32.xlu1 %v2463_v53  ;;  %2461 = vmax.xlane.f32.xlu0 %v2460_v54 }
 0x1d4   :  { %v2368_v55 = vpop.f32.mrf.mxu0  ;;  %v2444_v56 = vpop.f32.mrf.mxu1 }
 0x1d5   :  { %v2369_v57 = vadd.f32 %v2368_v55, %v1838_v19  ;;  %v2445_v58 = vadd.f32 %v2444_v56, %v1838_v19 }
 0x1d6   :  { %v4276_v59 = vpop.f32.mrf.mxu0  ;;  %v4281_v60 = vpop.f32.mrf.mxu1 }
 0x1d7   :  { %v2469_v61 = vsel %vm1839_vm2, %v2445_v58, -inf  ;;  %v2466_v62 = vsel %vm1839_vm2, %v2369_v57, -inf }
 0x1d8   :  { %2470 = vmax.xlane.f32.xlu1 %v2469_v61  ;;  %2467 = vmax.xlane.f32.xlu0 %v2466_v62 }
 0x243   :  { %v2450_v63 = vpop.xlane.xlu0 %2449 }
 0x244   :  { %v2472_v0 = vsub.f32 %v1913_v35, %v2450_v63 }
 0x246   :  { %v2480_v1 = vmul.f32 1.442695, %v2472_v0 }
 0x247   :  { %v2453_v3 = vpop.xlane.xlu0 %2452 }
 0x248   :  { %4367 = vpow2.f32 %v2480_v1  ;;  %v2473_v4 = vsub.f32 %v1989_v38, %v2453_v3  ;;  %v3122_v3 = vld [vmem:[%s5164_s4 + $0x10] sm:$0xff] }
 0x24a   :  { %v2482_v5 = vmul.f32 1.442695, %v2473_v4 }
 0x24c   :  { %4369 = vpow2.f32 %v2482_v5 }
 0x24d   :  { %v2456_v6 = vpop.xlane.xlu1 %2455 }
 0x24e   :  { %v2474_v7 = vsub.f32 %v2065_v43, %v2456_v6  ;;  %v3123_v6 = vld [vmem:[%s5164_s4 + $0x18] sm:$0xff] }
 0x250   :  { %v2484_v8 = vmul.f32 1.442695, %v2474_v7 }
 0x251   :  { %v2459_v11 = vpop.xlane.xlu1 %2458 }
 0x252   :  { %4371 = vpow2.f32 %v2484_v8  ;;  %v2475_v12 = vsub.f32 %v2141_v46, %v2459_v11  ;;  %v3124_v11 = vld [vmem:[%s5164_s4 + $0x20] sm:$0xff] }
 0x254   :  { %v2486_v13 = vmul.f32 1.442695, %v2475_v12 }
 0x255   :  { %v4368_v14 = vpop.eup %4367 }
 0x256   :  { %4373 = vpow2.f32 %v2486_v13  ;;  %v2496_v15 = vsel %vm1839_vm2, %v4368_v14, 0.0 }
 0x257   :  { %v2465_v16 = vpop.xlane.xlu1 %2464  ;;  %v2462_v21 = vpop.xlane.xlu0 %2461  ;;  %2497 = vadd.xlane.f32.xlu0 %v2496_v15 }
 0x258   :  { %v2477_v22 = vsub.f32 %v2293_v50, %v2465_v16  ;;  %v2476_v25 = vsub.f32 %v2217_v51, %v2462_v21  ;;  %v3127_v21 = vld [vmem:[%s5164_s4 + $0x38] sm:$0xff] }
 0x259   :  { %v4370_v9 = vpop.eup %4369 }
 0x25a   :  { %v2490_v27 = vmul.f32 1.442695, %v2477_v22  ;;  %v2488_v28 = vmul.f32 1.442695, %v2476_v25  ;;  %v2499_v31 = vsel %vm1839_vm2, %v4370_v9, 0.0  ;;  %v3126_v25 = vld [vmem:[%s5164_s4 + $0x30] sm:$0xff] }
 0x25b   :  { %2500 = vadd.xlane.f32.xlu1 %v2499_v31 }
 0x25c   :  { %4375 = vpow2.f32 %v2490_v27 }
 0x25d   :  { %4377 = vpow2.f32 %v2488_v28 }
 0x25f   :  { %v4372_v32 = vpop.eup %4371 }
 0x260   :  { %v2502_v33 = vsel %vm1839_vm2, %v4372_v32, 0.0 }
 0x261   :  { %v2471_v19 = vpop.xlane.xlu1 %2470  ;;  %v2468_v20 = vpop.xlane.xlu0 %2467  ;;  %2503 = vadd.xlane.f32.xlu0 %v2502_v33 }
 0x262   :  { %v2479_v34 = vsub.f32 %v2445_v58, %v2471_v19  ;;  %v2478_v35 = vsub.f32 %v2369_v57, %v2468_v20 }
 0x263   :  { %v4374_v36 = vpop.eup %4373 }
 0x264   :  { %v2494_v37 = vmul.f32 1.442695, %v2479_v34  ;;  %v2492_v38 = vmul.f32 1.442695, %v2478_v35  ;;  %v2505_v41 = vsel %vm1839_vm2, %v4374_v36, 0.0 }
 0x265   :  { %2506 = vadd.xlane.f32.xlu1 %v2505_v41 }
 0x266   :  { %4379 = vpow2.f32 %v2494_v37 }
 0x267   :  { %4381 = vpow2.f32 %v2492_v38 }
 0x269   :  { %v4376_v29 = vpop.eup %4375 }
 0x26a   :  { %v4378_v30 = vpop.eup %4377  ;;  %v2511_v42 = vsel %vm1839_vm2, %v4376_v29, 0.0 }
 0x26b   :  { %2512 = vadd.xlane.f32.xlu1 %v2511_v42  ;;  %v2508_v43 = vsel %vm1839_vm2, %v4378_v30, 0.0 }
 0x26c   :  { %2509 = vadd.xlane.f32.xlu0 %v2508_v43 }
 0x273   :  { %v4380_v44 = vpop.eup %4379 }
 0x274   :  { %v4382_v45 = vpop.eup %4381  ;;  %v2517_v46 = vsel %vm1839_vm2, %v4380_v44, 0.0 }
 0x275   :  { %2518 = vadd.xlane.f32.xlu1 %v2517_v46  ;;  %v2514_v47 = vsel %vm1839_vm2, %v4382_v45, 0.0 }
 0x276   :  { %2515 = vadd.xlane.f32.xlu0 %v2514_v47 }
 0x2e0   :  { %v2498_v48 = vpop.xlane.xlu0 %2497 }
 0x2e1   :  { %4383 = vrcp.f32 %v2498_v48 }
 0x2e4   :  { %v2501_v49 = vpop.xlane.xlu1 %2500 }
 0x2e5   :  { %4385 = vrcp.f32 %v2501_v49 }
 0x2ea   :  { %v2504_v39 = vpop.xlane.xlu0 %2503 }
 0x2eb   :  { %4387 = vrcp.f32 %v2504_v39 }
 0x2ee   :  { %v4384_v50 = vpop.eup %4383  ;;  %v2507_v51 = vpop.xlane.xlu1 %2506 }
 0x2ef   :  { %4389 = vrcp.f32 %v2507_v51  ;;  %v2528_v40 = vmul.f32 %v4384_v50, %v4368_v14  ;;  %v3125_v14 = vld [vmem:[%s5164_s4 + $0x28] sm:$0xff] }
 0x2f1   :  { %4285 = vmatmul.mubr.msk.f32.vlgmr.msra.gmra.mxu0 %vm1839_vm2, %v2528_v40 }
 0x2f2   :  { %v4386_v52 = vpop.eup %4385  ;;  %4293 = vmatpush3.msra.mxu0 %v5029_v17  ;;  %4294 = vmatprep.mubr.msk.f32.mxu0 %vm4422_vm1, %v4421_v2 }
 0x2f3   :  { %v2529_v53 = vmul.f32 %v4386_v52, %v4370_v9  ;;  %4302 = vmatprep.subr.mxu0 %v4421_v2 }
 0x2f4   :  { %v2513_v54 = vpop.xlane.xlu1 %2512 }
 0x2f5   :  { %4391 = vrcp.f32 %v2513_v54  ;;  %v2510_v55 = vpop.xlane.xlu0 %2509  ;;  %4290 = vmatmul.mubr.msk.f32.vlgmr.msra.gmra.mxu1 %vm1839_vm2, %v2529_v53 }
 0x2f6   :  { %4393 = vrcp.f32 %v2510_v55  ;;  %4298 = vmatpush3.msra.mxu1 %v5031_v18  ;;  %4299 = vmatprep.mubr.msk.f32.mxu1 %vm4422_vm1, %v4421_v2 }
 0x2f7   :  { %4307 = vmatprep.subr.mxu1 %v4421_v2 }
 0x2f8   :  { %v4388_v17 = vpop.eup %4387 }
 0x2f9   :  { %v2530_v56 = vmul.f32 %v4388_v17, %v4372_v32 }
 0x2fb   :  { %4295 = vmatmul.mubr.msk.f32.vlgmr.msra.gmra.mxu0 %vm1839_vm2, %v2530_v56 }
 0x2fc   :  { %v4390_v57 = vpop.eup %4389  ;;  %4303 = vmatpush3.msra.mxu0 %v5033_v23  ;;  %4304 = vmatprep.mubr.msk.f32.mxu0 %vm4422_vm1, %v4421_v2 }
 0x2fd   :  { %v2531_v58 = vmul.f32 %v4390_v57, %v4374_v36  ;;  %4312 = vmatprep.subr.mxu0 %v4421_v2 }
 0x2fe   :  { %v2519_v59 = vpop.xlane.xlu1 %2518 }
 0x2ff   :  { %4395 = vrcp.f32 %v2519_v59  ;;  %v2516_v18 = vpop.xlane.xlu0 %2515  ;;  %4300 = vmatmul.mubr.msk.f32.vlgmr.msra.gmra.mxu1 %vm1839_vm2, %v2531_v58 }
 0x300   :  { %4397 = vrcp.f32 %v2516_v18  ;;  %4308 = vmatpush3.msra.mxu1 %v5035_v24  ;;  %4309 = vmatprep.mubr.msk.f32.mxu1 %vm4422_vm1, %v4421_v2 }
 0x301   :  { %4317 = vmatprep.subr.mxu1 %v4421_v2 }
 0x302   :  { %v4392_v23 = vpop.eup %4391 }
 0x303   :  { %v4394_v60 = vpop.eup %4393  ;;  %v2533_v61 = vmul.f32 %v4392_v23, %v4376_v29 }
 0x304   :  { %v2532_v62 = vmul.f32 %v4394_v60, %v4378_v30 }
 0x305   :  { %4310 = vmatmul.mubr.msk.f32.vlgmr.msra.gmra.mxu1 %vm1839_vm2, %v2533_v61 }
 0x306   :  { %4305 = vmatmul.mubr.msk.f32.vlgmr.msra.gmra.mxu0 %vm1839_vm2, %v2532_v62  ;;  %4318 = vmatpush3.msra.mxu1 %v5039_v26  ;;  %v3121_v26 = vld [vmem:[%s5164_s4 + $0x8] sm:$0xff] }
 0x307   :  { %4313 = vmatpush3.msra.mxu0 %v5037_v10  ;;  %4314 = vmatprep.mubr.msk.f32.mxu0 %vm4422_vm1, %v4421_v2  ;;  %v3120_v10 = vld [vmem:[%s5164_s4] sm:$0xff] }
 0x308   :  { %4319 = vmatprep.mubr.msk.f32.mxu1 %vm4422_vm1, %v4421_v2  ;;  %4322 = vmatprep.subr.mxu0 %v4421_v2 }
 0x309   :  { %4327 = vmatprep.subr.mxu1 %v4421_v2 }
 0x30c   :  { %v4396_v24 = vpop.eup %4395 }
 0x30d   :  { %v4398_v63 = vpop.eup %4397  ;;  %v2535_v0 = vmul.f32 %v4396_v24, %v4380_v44 }
 0x30e   :  { %v2534_v1 = vmul.f32 %v4398_v63, %v4382_v45  ;;  %v3809_v45 = vld [vmem:[%s5165_s5] ss:$0 sm:$0xff]  ;;  %s4423_s5 = smov [#allocation2]  }
 0x30f   :  { %4320 = vmatmul.mubr.msk.f32.vlgmr.msra.gmra.mxu1 %vm1839_vm2, %v2535_v0  ;;  %s3742_s14 = sshll.u32 %s4423_s5, 4  ;;  %s3743_s14 = int_to_ptr.vmem [resolvable:$true] %s3742_s14 }
 0x310   :  { %4315 = vmatmul.mubr.msk.f32.vlgmr.msra.gmra.mxu0 %vm1839_vm2, %v2534_v1  ;;  %4329 = vmatprep.mubr.msk.f32.mxu1 %vm4422_vm1, %v4421_v2  ;;  %s4399_s15 = scalar_lea.vmem %s3743_s14, 256  ;;  %p4404_p1 = scmp.lt.s32.totalorder %s3743_s14, %s3743_s14 }
 0x311   :  { %4324 = vmatprep.mubr.msk.f32.mxu0 %vm4422_vm1, %v4421_v2  ;;  %4323 = vmatpush3.msra.mxu0 %v3120_v10  ;;  %p4400_p0 = scmp.ne.s32.totalorder %s3743_s14, %s4399_s15  ;;  %p4405_p2 = scmp.lt.s32.totalorder %s4399_s15, %s4399_s15 }
 0x312   :  { %4332 = vmatprep.subr.mxu0 %v4421_v2  ;;  %4328 = vmatpush3.msra.mxu1 %v3121_v26 }
 0x313   :  { %4337 = vmatprep.subr.mxu1 %v4421_v2  ;;  %p4406_p3 = por %p4405_p2, %p4404_p1 }
 0x315   :  { %p4407_p4 = pnand %p4406_p3, %p4400_p0 }
 0x3b1   :  { %v2605_v4 = vpop.f32.mrf.mxu0 }
 0x3b2   :  { %4325 = vmatmul.mubr.msk.f32.vlgmr.msra.gmra.mxu0 %vm1839_vm2, %v2605_v4 }
 0x3b3   :  { %v4286_v5 = vpop.f32.mrf.mxu0  ;;  %4333 = vmatpush3.msra.mxu0 %v3122_v3  ;;  %4334 = vmatprep.mubr.msk.f32.mxu0 %vm4422_vm1, %v4421_v2 }
 0x3b4   :  { %4342 = vmatprep.subr.mxu0 %v4421_v2 }
 0x3b5   :  { %v2678_v7 = vpop.f32.mrf.mxu1 }
 0x3b6   :  { %4330 = vmatmul.mubr.msk.f32.vlgmr.msra.gmra.mxu1 %vm1839_vm2, %v2678_v7 }
 0x3b7   :  { %v4291_v8 = vpop.f32.mrf.mxu1  ;;  %4338 = vmatpush3.msra.mxu1 %v3123_v6  ;;  %4339 = vmatprep.mubr.msk.f32.mxu1 %vm4422_vm1, %v4421_v2 }
 0x3b8   :  { %4347 = vmatprep.subr.mxu1 %v4421_v2 }
 0x3bb   :  { %v2751_v12 = vpop.f32.mrf.mxu0 }
 0x3bc   :  { %4335 = vmatmul.mubr.msk.f32.vlgmr.msra.gmra.mxu0 %vm1839_vm2, %v2751_v12 }
 0x3bd   :  { %v4296_v13 = vpop.f32.mrf.mxu0  ;;  %4343 = vmatpush3.msra.mxu0 %v3124_v11  ;;  %4344 = vmatprep.mubr.msk.f32.mxu0 %vm4422_vm1, %v4421_v2 }
 0x3be   :  { %4352 = vmatprep.subr.mxu0 %v4421_v2 }
 0x3bf   :  { %v2824_v15 = vpop.f32.mrf.mxu1 }
 0x3c0   :  { %4340 = vmatmul.mubr.msk.f32.vlgmr.msra.gmra.mxu1 %vm1839_vm2, %v2824_v15 }
 0x3c1   :  { %v4301_v16 = vpop.f32.mrf.mxu1  ;;  %4348 = vmatpush3.msra.mxu1 %v3125_v14  ;;  %4349 = vmatprep.mubr.msk.f32.mxu1 %vm4422_vm1, %v4421_v2 }
 0x3c2   :  { %4357 = vmatprep.subr.mxu1 %v4421_v2 }
 0x3c5   :  { %v2970_v22 = vpop.f32.mrf.mxu1 }
 0x3c6   :  { %v2897_v9 = vpop.f32.mrf.mxu0  ;;  %4350 = vmatmul.mubr.msk.f32.vlgmr.msra.gmra.mxu1 %vm1839_vm2, %v2970_v22 }
 0x3c7   :  { %4345 = vmatmul.mubr.msk.f32.vlgmr.msra.gmra.mxu0 %vm1839_vm2, %v2897_v9  ;;  %v4311_v27 = vpop.f32.mrf.mxu1  ;;  %4358 = vmatpush3.msra.mxu1 %v3127_v21 }
 0x3c8   :  { %v4306_v28 = vpop.f32.mrf.mxu0  ;;  %4353 = vmatpush3.msra.mxu0 %v3126_v25  ;;  %4354 = vmatprep.mubr.msk.f32.mxu0 %vm4422_vm1, %v4421_v2 }
 0x3c9   :  { %4359 = vmatprep.mubr.msk.f32.mxu1 %vm4422_vm1, %v4421_v2 }
 0x3cf   :  { %v3116_v31 = vpop.f32.mrf.mxu1 }
 0x3d0   :  { %v3043_v32 = vpop.f32.mrf.mxu0  ;;  %4360 = vmatmul.mubr.msk.f32.vlgmr.msra.gmra.mxu1 %vm1839_vm2, %v3116_v31 }
 0x3d1   :  { %4355 = vmatmul.mubr.msk.f32.vlgmr.msra.gmra.mxu0 %vm1839_vm2, %v3043_v32  ;;  %v4321_v33 = vpop.f32.mrf.mxu1 }
 0x3d2   :  { %v4316_v19 = vpop.f32.mrf.mxu0 }
 0x472   :  { %v3197_v20 = vpop.f32.mrf.mxu0 }
 0x473   :  { %v3712_v41 = vsel %vm64_vm0, %v3197_v20, 0.0 }
 0x474   :  { %v4326_v34 = vpop.f32.mrf.mxu0 }
 0x476   :  { %v3270_v35 = vpop.f32.mrf.mxu1 }
 0x477   :  { %v3713_v37 = vsel %vm64_vm0, %v3270_v35, 0.0 }
 0x478   :  { %v4331_v36 = vpop.f32.mrf.mxu1  ;;  %v3714_v2 = vadd.f32 %v3713_v37, %v3712_v41 }
 0x47c   :  { %v3343_v38 = vpop.f32.mrf.mxu0 }
 0x47d   :  { %v3715_v29 = vsel %vm64_vm0, %v3343_v38, 0.0 }
 0x47e   :  { %v4336_v30 = vpop.f32.mrf.mxu0  ;;  %v3716_v42 = vadd.f32 %v3715_v29, %v3714_v2 }
 0x480   :  { %v3416_v43 = vpop.f32.mrf.mxu1 }
 0x481   :  { %v3717_v44 = vsel %vm64_vm0, %v3416_v43, 0.0 }
 0x482   :  { %v3718_v46 = vadd.f32 %v3717_v44, %v3716_v42  ;;  %v4341_v47 = vpop.f32.mrf.mxu1 }
 0x484   :  { %v3733_v48 = vadd.f32 %v3809_v45, %v3718_v46 }
 0x486   :  { %3735 = vst.msk [vmem:[#allocation2] sm:$0xff] %vm64_vm0, %v3733_v48  ;;  %v3562_v49 = vpop.f32.mrf.mxu1 }
 0x487   :  { %v3489_v39 = vpop.f32.mrf.mxu0  ;;  %v3720_v52 = vsel %vm64_vm0, %v3562_v49, 0.0 }
 0x488   :  { %v4351_v50 = vpop.f32.mrf.mxu1  ;;  %v3719_v40 = vsel %vm64_vm0, %v3489_v39, 0.0 }
 0x489   :  { %v4346_v51 = vpop.f32.mrf.mxu0  ;;  %v3721_v54 = vadd.f32 %v3720_v52, %v3719_v40 }
 0x490   :  { %v3708_v53 = vpop.f32.mrf.mxu1 }
 0x491   :  { %v3635_v55 = vpop.f32.mrf.mxu0  ;;  %v3724_v59 = vsel %vm64_vm0, %v3708_v53, 0.0 }
 0x492   :  { %v3722_v17 = vsel %vm64_vm0, %v3635_v55, 0.0  ;;  %v4361_v56 = vpop.f32.mrf.mxu1 }
 0x493   :  { %v3723_v57 = vadd.f32 %v3722_v17, %v3721_v54  ;;  %v4356_v58 = vpop.f32.mrf.mxu0 }
 0x495   :  { %v3725_v18 = vadd.f32 %v3724_v59, %v3723_v57 }
 0x497   :  { %v3734_v23 = vadd.f32 %v3809_v45, %v3725_v18 }
 0x499   :  { %3736 = vst.msk [vmem:[#allocation2 + $0x8] sm:$0xff] %vm64_vm0, %v3734_v23 }
 0x49a   :  { %4410 = shalt.err (!%p4407_p4)
}
 0x49b   :  { %s4424_s16 = smov 128   ;;  %s4425_s17 = smov 8  }
 0x49c   :  { %3748 = dma.vmem_to_hbm [thread:$0]  %s3743_s14, 256, %s5166_s6, [#allocation3], %s4424_s16, %s4424_s16, %s4425_s17  }
 0x49d   :  { %4419 = dma.done.wait [#allocation3], 256  }
 0x49e   :  { %4420 = vsyncadd [#allocation3], 4294967040 }
 0x49f   :  { %3752 = vsyncpa [#allocation3], 1 }

</bundles_post_ra>
